<compile_context>
chip_gen: v7x
topology: tpu7x:2x2x1
jax: 0.10.0
libtpu: 0.0.40
codegen_flags: <defaults>
</compile_context>

<pallas_src>
import functools

import jax
import jax.numpy as jnp
from jax.experimental import pallas as pl
from jax.experimental.pallas import tpu as pltpu

EPS_ARTANH = 1e-5   # geoopt-style clamp on the artanh argument
MIN_NORM = 1e-15    # geoopt clamp_min on denominators / norms
LANE = 128          # TPU lane width; batch tiles are multiples of this


def _round_up(n, m):
    return ((n + m - 1) // m) * m


def _two_tower_kernel(ue_ref, ae_ref,
                      w1u_ref, b1u_ref, w2u_ref, b2u_ref,
                      w1a_ref, b1a_ref, w2a_ref, b2a_ref,
                      out_ref):
    # Inputs arrive transposed: features on sublanes, batch tile on lanes.
    xu = ue_ref[...].astype(jnp.float32)                       # (E, TB)
    xa = ae_ref[...].astype(jnp.float32)                       # (E, TB)

    # ---- user tower: relu(W1 x + b1) -> relu(W2 h + b2), all (H, TB) ----
    hu = jnp.dot(w1u_ref[...], xu, preferred_element_type=jnp.float32) + b1u_ref[...]
    hu = jnp.maximum(hu, 0.0)
    xu = jnp.dot(w2u_ref[...], hu, preferred_element_type=jnp.float32) + b2u_ref[...]
    xu = jnp.maximum(xu, 0.0)

    # ---- anime tower ----
    ha = jnp.dot(w1a_ref[...], xa, preferred_element_type=jnp.float32) + b1a_ref[...]
    ha = jnp.maximum(ha, 0.0)
    xa = jnp.dot(w2a_ref[...], ha, preferred_element_type=jnp.float32) + b2a_ref[...]
    xa = jnp.maximum(xa, 0.0)

    # ---- Poincare ball distance (curvature c = 1), batch on lanes ----
    # mobius_add(-x, y) = [(1 - 2<x,y> + ||y||^2)(-x) + (1 - ||x||^2) y]
    #                     / (1 - 2<x,y> + ||x||^2 ||y||^2)
    x, y = xu, xa                                              # (H, TB)
    x2 = jnp.sum(x * x, axis=0, keepdims=True)                 # (1, TB)
    y2 = jnp.sum(y * y, axis=0, keepdims=True)
    xy = jnp.sum(x * y, axis=0, keepdims=True)

    t = 1.0 - 2.0 * xy                                         # shared term
    num = (t + y2) * (-x) + (1.0 - x2) * y                     # (H, TB)
    den = jnp.maximum(t + x2 * y2, MIN_NORM)                   # (1, TB)
    diff = num * pl.reciprocal(den, approx=True)               # EUP reciprocal

    nrm = jnp.sqrt(jnp.maximum(jnp.sum(diff * diff, axis=0, keepdims=True), MIN_NORM))
    z = jnp.clip(nrm, -1.0 + EPS_ARTANH, 1.0 - EPS_ARTANH)
    # 2 * artanh(z) = log((1 + z) / (1 - z)); divide via EUP reciprocal.
    dist = jnp.log((1.0 + z) * pl.reciprocal(1.0 - z, approx=True))
    dist = jnp.maximum(dist, 0.0)                              # distance is non-negative

    out_ref[...] = -dist                                       # (1, TB), lane-dense


@functools.partial(jax.jit, static_argnames=("tb",))
def two_tower_forward(user_ids, anime_ids, params, *, tb=1024):
    """Embedding gather (XLA glue) + one tiled Pallas kernel for both towers
    and the Poincare distance.  Returns (B,) similarity = -dist."""
    B = user_ids.shape[0]
    TB = min(tb, _round_up(B, LANE))        # lane-dense batch tile
    Bp = _round_up(B, TB)                   # padded batch

    uid = jnp.pad(user_ids, (0, Bp - B))    # pad with id 0 (valid row)
    aid = jnp.pad(anime_ids, (0, Bp - B))

    # TODO(synk): the embedding-table gather stays in XLA glue; fusing it in-kernel
    # would need per-row pl.Element BlockSpecs or a manual DMA gather.
    ue = params["user_embedding"][uid].T    # (E, Bp) bf16, batch on lanes
    ae = params["anime_embedding"][aid].T   # (E, Bp) bf16

    E = ue.shape[0]
    H = params["w1u"].shape[0]

    emb_spec = pl.BlockSpec((E, TB), lambda i: (0, i))

    def resident(shape):                    # weights/biases stay resident across the grid
        return pl.BlockSpec(shape, lambda i: (0, 0))

    out = pl.pallas_call(
        _two_tower_kernel,
        out_shape=jax.ShapeDtypeStruct((1, Bp), jnp.float32),
        grid=(Bp // TB,),
        in_specs=[
            emb_spec, emb_spec,
            resident((H, E)), resident((H, 1)), resident((H, H)), resident((H, 1)),
            resident((H, E)), resident((H, 1)), resident((H, H)), resident((H, 1)),
        ],
        out_specs=pl.BlockSpec((1, TB), lambda i: (0, i)),
        compiler_params=pltpu.CompilerParams(
            dimension_semantics=("parallel",),
            vmem_limit_bytes=32 * 1024 * 1024,
        ),
    )(ue, ae,
      params["w1u"], params["b1u"], params["w2u"], params["b2u"],
      params["w1a"], params["b1a"], params["w2a"], params["b2a"])

    return out[0, :B]                       # (B,), matching the PyTorch output


def two_tower_reference(user_ids, anime_ids, params):
    """Pure-JAX reference (same math, batch-on-rows layout) for validation."""
    def tower(x, w1, b1, w2, b2):
        h = jnp.maximum(x @ w1.T + b1[:, 0], 0.0)
        return jnp.maximum(h @ w2.T + b2[:, 0], 0.0)

    xu = tower(params["user_embedding"][user_ids].astype(jnp.float32),
               params["w1u"], params["b1u"], params["w2u"], params["b2u"])
    xa = tower(params["anime_embedding"][anime_ids].astype(jnp.float32),
               params["w1a"], params["b1a"], params["w2a"], params["b2a"])

    x2 = jnp.sum(xu * xu, axis=-1)
    y2 = jnp.sum(xa * xa, axis=-1)
    xy = jnp.sum(xu * xa, axis=-1)
    t = 1.0 - 2.0 * xy
    num = (t + y2)[:, None] * (-xu) + (1.0 - x2)[:, None] * xa
    den = jnp.maximum(t + x2 * y2, MIN_NORM)
    diff = num / den[:, None]
    nrm = jnp.sqrt(jnp.maximum(jnp.sum(diff * diff, axis=-1), MIN_NORM))
    z = jnp.clip(nrm, -1.0 + EPS_ARTANH, 1.0 - EPS_ARTANH)
    return -jnp.maximum(jnp.log((1.0 + z) / (1.0 - z)), 0.0)


def init_params(key, num_users, num_animes, embedding_dim, hidden_dim=32):
    ks = jax.random.split(key, 10)

    def ball_point(k, shape):
        # deterministic stand-in for geoopt's manifold.random(): small normal
        # points projected strictly inside the unit ball; stored in bf16.
        p = jax.random.normal(k, shape, jnp.float32) * (1.0 / jnp.sqrt(float(shape[-1])))
        nrm = jnp.linalg.norm(p, axis=-1, keepdims=True)
        max_norm = 1.0 - 1e-3
        scale = jnp.where(nrm > max_norm, max_norm / jnp.maximum(nrm, MIN_NORM), 1.0)
        return (p * scale).astype(jnp.bfloat16)

    def linear(kw, kb, fan_in, fan_out):
        # PyTorch nn.Linear default init; weight kept in native (out, in) layout,
        # bias as an (out, 1) column so it broadcasts along the lane (batch) axis.
        bound = 1.0 / (fan_in ** 0.5)
        w = jax.random.uniform(kw, (fan_out, fan_in), jnp.float32, -bound, bound)
        b = jax.random.uniform(kb, (fan_out, 1), jnp.float32, -bound, bound)
        return w, b

    w1u, b1u = linear(ks[2], ks[3], embedding_dim, hidden_dim)
    w2u, b2u = linear(ks[4], ks[5], hidden_dim, hidden_dim)
    w1a, b1a = linear(ks[6], ks[7], embedding_dim, hidden_dim)
    w2a, b2a = linear(ks[8], ks[9], hidden_dim, hidden_dim)

    return {
        "user_embedding": ball_point(ks[0], (num_users, embedding_dim)),
        "anime_embedding": ball_point(ks[1], (num_animes, embedding_dim)),
        "w1u": w1u, "b1u": b1u, "w2u": w2u, "b2u": b2u,
        "w1a": w1a, "b1a": b1a, "w2a": w2a, "b2a": b2a,
    }


if __name__ == "__main__":
    num_users, num_animes = 64, 64
    embedding_dim, hidden_dim = 16, 32
    batch = 8

    key = jax.random.PRNGKey(0)
    kp, ku, ka = jax.random.split(key, 3)
    params = init_params(kp, num_users, num_animes, embedding_dim, hidden_dim)

    user_ids = jax.random.randint(ku, (batch,), 0, num_users)
    anime_ids = jax.random.randint(ka, (batch,), 0, num_animes)

    sim = two_tower_forward(user_ids, anime_ids, params)
    sim = jax.block_until_ready(sim)

    ref = jax.block_until_ready(two_tower_reference(user_ids, anime_ids, params))

    assert sim.shape == (batch,)
    assert bool(jnp.all(jnp.isfinite(sim)))
    assert bool(jnp.all(sim <= 0.0))                     # similarity = -dist <= 0
    assert bool(jnp.allclose(sim, ref, atol=2e-2, rtol=2e-2)), (sim, ref)
    print("KERNEL_OK")
</pallas_src>

<mosaic_0001>
module attributes {stable_mosaic.version = 11 : i64} {
  func.func @_two_tower_kernel(%arg0: i32, %arg1: memref<16x128xbf16, #tpu.memory_space<vmem>>, %arg2: memref<16x128xbf16, #tpu.memory_space<vmem>>, %arg3: memref<32x16xf32, #tpu.memory_space<vmem>>, %arg4: memref<32x1xf32, #tpu.memory_space<vmem>>, %arg5: memref<32x32xf32, #tpu.memory_space<vmem>>, %arg6: memref<32x1xf32, #tpu.memory_space<vmem>>, %arg7: memref<32x16xf32, #tpu.memory_space<vmem>>, %arg8: memref<32x1xf32, #tpu.memory_space<vmem>>, %arg9: memref<32x32xf32, #tpu.memory_space<vmem>>, %arg10: memref<32x1xf32, #tpu.memory_space<vmem>>, %arg11: memref<1x128xf32, #tpu.memory_space<vmem>>) attributes {dimension_semantics = [#tpu.dimension_semantics<parallel>], iteration_bounds = array<i64: 1>, scalar_prefetch = 0 : i64, scratch_operands = 0 : i64, tpu.core_type = #tpu.core_type<tc>, window_params = [{transform_indices = @transform_0, window_bounds = array<i64: 16, 128>}, {transform_indices = @transform_1, window_bounds = array<i64: 16, 128>}, {pipeline_mode = #tpu.pipeline_mode<synchronous>, transform_indices = @transform_2, window_bounds = array<i64: 32, 16>}, {pipeline_mode = #tpu.pipeline_mode<synchronous>, transform_indices = @transform_3, window_bounds = array<i64: 32, 1>}, {pipeline_mode = #tpu.pipeline_mode<synchronous>, transform_indices = @transform_4, window_bounds = array<i64: 32, 32>}, {pipeline_mode = #tpu.pipeline_mode<synchronous>, transform_indices = @transform_5, window_bounds = array<i64: 32, 1>}, {pipeline_mode = #tpu.pipeline_mode<synchronous>, transform_indices = @transform_6, window_bounds = array<i64: 32, 16>}, {pipeline_mode = #tpu.pipeline_mode<synchronous>, transform_indices = @transform_7, window_bounds = array<i64: 32, 1>}, {pipeline_mode = #tpu.pipeline_mode<synchronous>, transform_indices = @transform_8, window_bounds = array<i64: 32, 32>}, {pipeline_mode = #tpu.pipeline_mode<synchronous>, transform_indices = @transform_9, window_bounds = array<i64: 32, 1>}, {transform_indices = @transform_10, window_bounds = array<i64: 1, 128>}]} {
    %c0 = arith.constant 0 : index
    %c0_0 = arith.constant 0 : index
    %0 = vector.load %arg1[%c0, %c0_0] : memref<16x128xbf16, #tpu.memory_space<vmem>>, vector<16x128xbf16>
    %1 = arith.extf %0 : vector<16x128xbf16> to vector<16x128xf32>
    %c0_1 = arith.constant 0 : index
    %c0_2 = arith.constant 0 : index
    %2 = vector.load %arg2[%c0_1, %c0_2] : memref<16x128xbf16, #tpu.memory_space<vmem>>, vector<16x128xbf16>
    %3 = arith.extf %2 : vector<16x128xbf16> to vector<16x128xf32>
    %c0_3 = arith.constant 0 : index
    %c0_4 = arith.constant 0 : index
    %4 = vector.load %arg3[%c0_3, %c0_4] : memref<32x16xf32, #tpu.memory_space<vmem>>, vector<32x16xf32>
    %cst = arith.constant dense<0.000000e+00> : vector<32x128xf32>
    %5 = tpu.matmul %4, %1, %cst {dimension_numbers = #tpu.dot_dimension_numbers<[1], [0], [0], [1], [0, 0, 1, 1], [], []>} : vector<32x16xf32>, vector<16x128xf32>, vector<32x128xf32> -> vector<32x128xf32>
    %c0_5 = arith.constant 0 : index
    %c0_6 = arith.constant 0 : index
    %6 = vector.load %arg4[%c0_5, %c0_6] : memref<32x1xf32, #tpu.memory_space<vmem>>, vector<32x1xf32>
    %7 = vector.broadcast %6 : vector<32x1xf32> to vector<32x128xf32>
    %8 = arith.addf %5, %7 : vector<32x128xf32>
    %cst_7 = arith.constant 0.000000e+00 : f32
    %9 = vector.broadcast %cst_7 : f32 to vector<32x128xf32>
    %10 = arith.maximumf %8, %9 : vector<32x128xf32>
    %c0_8 = arith.constant 0 : index
    %c0_9 = arith.constant 0 : index
    %11 = vector.load %arg5[%c0_8, %c0_9] : memref<32x32xf32, #tpu.memory_space<vmem>>, vector<32x32xf32>
    %cst_10 = arith.constant dense<0.000000e+00> : vector<32x128xf32>
    %12 = tpu.matmul %11, %10, %cst_10 {dimension_numbers = #tpu.dot_dimension_numbers<[1], [0], [0], [1], [0, 0, 1, 1], [], []>} : vector<32x32xf32>, vector<32x128xf32>, vector<32x128xf32> -> vector<32x128xf32>
    %c0_11 = arith.constant 0 : index
    %c0_12 = arith.constant 0 : index
    %13 = vector.load %arg6[%c0_11, %c0_12] : memref<32x1xf32, #tpu.memory_space<vmem>>, vector<32x1xf32>
    %14 = vector.broadcast %13 : vector<32x1xf32> to vector<32x128xf32>
    %15 = arith.addf %12, %14 : vector<32x128xf32>
    %cst_13 = arith.constant 0.000000e+00 : f32
    %16 = vector.broadcast %cst_13 : f32 to vector<32x128xf32>
    %17 = arith.maximumf %15, %16 : vector<32x128xf32>
    %c0_14 = arith.constant 0 : index
    %c0_15 = arith.constant 0 : index
    %18 = vector.load %arg7[%c0_14, %c0_15] : memref<32x16xf32, #tpu.memory_space<vmem>>, vector<32x16xf32>
    %cst_16 = arith.constant dense<0.000000e+00> : vector<32x128xf32>
    %19 = tpu.matmul %18, %3, %cst_16 {dimension_numbers = #tpu.dot_dimension_numbers<[1], [0], [0], [1], [0, 0, 1, 1], [], []>} : vector<32x16xf32>, vector<16x128xf32>, vector<32x128xf32> -> vector<32x128xf32>
    %c0_17 = arith.constant 0 : index
    %c0_18 = arith.constant 0 : index
    %20 = vector.load %arg8[%c0_17, %c0_18] : memref<32x1xf32, #tpu.memory_space<vmem>>, vector<32x1xf32>
    %21 = vector.broadcast %20 : vector<32x1xf32> to vector<32x128xf32>
    %22 = arith.addf %19, %21 : vector<32x128xf32>
    %cst_19 = arith.constant 0.000000e+00 : f32
    %23 = vector.broadcast %cst_19 : f32 to vector<32x128xf32>
    %24 = arith.maximumf %22, %23 : vector<32x128xf32>
    %c0_20 = arith.constant 0 : index
    %c0_21 = arith.constant 0 : index
    %25 = vector.load %arg9[%c0_20, %c0_21] : memref<32x32xf32, #tpu.memory_space<vmem>>, vector<32x32xf32>
    %cst_22 = arith.constant dense<0.000000e+00> : vector<32x128xf32>
    %26 = tpu.matmul %25, %24, %cst_22 {dimension_numbers = #tpu.dot_dimension_numbers<[1], [0], [0], [1], [0, 0, 1, 1], [], []>} : vector<32x32xf32>, vector<32x128xf32>, vector<32x128xf32> -> vector<32x128xf32>
    %c0_23 = arith.constant 0 : index
    %c0_24 = arith.constant 0 : index
    %27 = vector.load %arg10[%c0_23, %c0_24] : memref<32x1xf32, #tpu.memory_space<vmem>>, vector<32x1xf32>
    %28 = vector.broadcast %27 : vector<32x1xf32> to vector<32x128xf32>
    %29 = arith.addf %26, %28 : vector<32x128xf32>
    %cst_25 = arith.constant 0.000000e+00 : f32
    %30 = vector.broadcast %cst_25 : f32 to vector<32x128xf32>
    %31 = arith.maximumf %29, %30 : vector<32x128xf32>
    %32 = arith.mulf %17, %17 : vector<32x128xf32>
    %cst_26 = arith.constant dense<0.000000e+00> : vector<128xf32>
    %33 = vector.multi_reduction <add>, %32, %cst_26 [0] : vector<32x128xf32> to vector<128xf32>
    %34 = vector.shape_cast %33 : vector<128xf32> to vector<1x128xf32>
    %35 = arith.mulf %31, %31 : vector<32x128xf32>
    %cst_27 = arith.constant dense<0.000000e+00> : vector<128xf32>
    %36 = vector.multi_reduction <add>, %35, %cst_27 [0] : vector<32x128xf32> to vector<128xf32>
    %37 = vector.shape_cast %36 : vector<128xf32> to vector<1x128xf32>
    %38 = arith.mulf %17, %31 : vector<32x128xf32>
    %cst_28 = arith.constant dense<0.000000e+00> : vector<128xf32>
    %39 = vector.multi_reduction <add>, %38, %cst_28 [0] : vector<32x128xf32> to vector<128xf32>
    %40 = vector.shape_cast %39 : vector<128xf32> to vector<1x128xf32>
    %cst_29 = arith.constant 2.000000e+00 : f32
    %41 = vector.broadcast %cst_29 : f32 to vector<1x128xf32>
    %42 = arith.mulf %41, %40 : vector<1x128xf32>
    %cst_30 = arith.constant 1.000000e+00 : f32
    %43 = vector.broadcast %cst_30 : f32 to vector<1x128xf32>
    %44 = arith.subf %43, %42 : vector<1x128xf32>
    %45 = arith.addf %44, %37 : vector<1x128xf32>
    %cst_31 = arith.constant 0.000000e+00 : f32
    %46 = vector.broadcast %cst_31 : f32 to vector<32x128xf32>
    %47 = arith.subf %46, %17 : vector<32x128xf32>
    %48 = vector.broadcast %45 : vector<1x128xf32> to vector<32x128xf32>
    %49 = arith.mulf %48, %47 : vector<32x128xf32>
    %cst_32 = arith.constant 1.000000e+00 : f32
    %50 = vector.broadcast %cst_32 : f32 to vector<1x128xf32>
    %51 = arith.subf %50, %34 : vector<1x128xf32>
    %52 = vector.broadcast %51 : vector<1x128xf32> to vector<32x128xf32>
    %53 = arith.mulf %52, %31 : vector<32x128xf32>
    %54 = arith.addf %49, %53 : vector<32x128xf32>
    %55 = arith.mulf %34, %37 : vector<1x128xf32>
    %56 = arith.addf %44, %55 : vector<1x128xf32>
    %cst_33 = arith.constant 1.000000e-15 : f32
    %57 = vector.broadcast %cst_33 : f32 to vector<1x128xf32>
    %58 = arith.maximumf %56, %57 : vector<1x128xf32>
    %59 = tpu.reciprocal %58 {approx = true} : vector<1x128xf32> -> vector<1x128xf32>
    %60 = vector.broadcast %59 : vector<1x128xf32> to vector<32x128xf32>
    %61 = arith.mulf %54, %60 : vector<32x128xf32>
    %62 = arith.mulf %61, %61 : vector<32x128xf32>
    %cst_34 = arith.constant dense<0.000000e+00> : vector<128xf32>
    %63 = vector.multi_reduction <add>, %62, %cst_34 [0] : vector<32x128xf32> to vector<128xf32>
    %64 = vector.shape_cast %63 : vector<128xf32> to vector<1x128xf32>
    %cst_35 = arith.constant 1.000000e-15 : f32
    %65 = vector.broadcast %cst_35 : f32 to vector<1x128xf32>
    %66 = arith.maximumf %64, %65 : vector<1x128xf32>
    %67 = math.sqrt %66 : vector<1x128xf32>
    %cst_36 = arith.constant -0.999989986 : f32
    %cst_37 = arith.constant 0.999989986 : f32
    %68 = vector.broadcast %cst_36 : f32 to vector<1x128xf32>
    %69 = arith.maximumf %68, %67 : vector<1x128xf32>
    %70 = vector.broadcast %cst_37 : f32 to vector<1x128xf32>
    %71 = arith.minimumf %70, %69 : vector<1x128xf32>
    %cst_38 = arith.constant 1.000000e+00 : f32
    %72 = vector.broadcast %cst_38 : f32 to vector<1x128xf32>
    %73 = arith.addf %72, %71 : vector<1x128xf32>
    %cst_39 = arith.constant 1.000000e+00 : f32
    %74 = vector.broadcast %cst_39 : f32 to vector<1x128xf32>
    %75 = arith.subf %74, %71 : vector<1x128xf32>
    %76 = tpu.reciprocal %75 {approx = true} : vector<1x128xf32> -> vector<1x128xf32>
    %77 = arith.mulf %73, %76 : vector<1x128xf32>
    %78 = math.log %77 : vector<1x128xf32>
    %cst_40 = arith.constant 0.000000e+00 : f32
    %79 = vector.broadcast %cst_40 : f32 to vector<1x128xf32>
    %80 = arith.maximumf %78, %79 : vector<1x128xf32>
    %cst_41 = arith.constant 0.000000e+00 : f32
    %81 = vector.broadcast %cst_41 : f32 to vector<1x128xf32>
    %82 = arith.subf %81, %80 : vector<1x128xf32>
    %c0_42 = arith.constant 0 : index
    %c0_43 = arith.constant 0 : index
    %83 = vector.load %arg11[%c0_42, %c0_43] : memref<1x128xf32, #tpu.memory_space<vmem>>, vector<1x128xf32>
    tpu.vector_store %arg11[%c0_42, %c0_43], %82 {strides = array<i32>} : memref<1x128xf32, #tpu.memory_space<vmem>>, vector<1x128xf32>,
    return
  }
  func.func @transform_0(%arg0: i32) -> (i32, i32) {
    %c0_i32 = arith.constant 0 : i32
    %c0_i32_0 = arith.constant 0 : i32
    return %c0_i32, %arg0 : i32, i32
  }
  func.func @transform_1(%arg0: i32) -> (i32, i32) {
    %c0_i32 = arith.constant 0 : i32
    %c0_i32_0 = arith.constant 0 : i32
    return %c0_i32, %arg0 : i32, i32
  }
  func.func @transform_2(%arg0: i32) -> (i32, i32) {
    %c0_i32 = arith.constant 0 : i32
    %c0_i32_0 = arith.constant 0 : i32
    %c0_i32_1 = arith.constant 0 : i32
    return %c0_i32, %c0_i32_0 : i32, i32
  }
  func.func @transform_3(%arg0: i32) -> (i32, i32) {
    %c0_i32 = arith.constant 0 : i32
    %c0_i32_0 = arith.constant 0 : i32
    %c0_i32_1 = arith.constant 0 : i32
    return %c0_i32, %c0_i32_0 : i32, i32
  }
  func.func @transform_4(%arg0: i32) -> (i32, i32) {
    %c0_i32 = arith.constant 0 : i32
    %c0_i32_0 = arith.constant 0 : i32
    %c0_i32_1 = arith.constant 0 : i32
    return %c0_i32, %c0_i32_0 : i32, i32
  }
  func.func @transform_5(%arg0: i32) -> (i32, i32) {
    %c0_i32 = arith.constant 0 : i32
    %c0_i32_0 = arith.constant 0 : i32
    %c0_i32_1 = arith.constant 0 : i32
    return %c0_i32, %c0_i32_0 : i32, i32
  }
  func.func @transform_6(%arg0: i32) -> (i32, i32) {
    %c0_i32 = arith.constant 0 : i32
    %c0_i32_0 = arith.constant 0 : i32
    %c0_i32_1 = arith.constant 0 : i32
    return %c0_i32, %c0_i32_0 : i32, i32
  }
  func.func @transform_7(%arg0: i32) -> (i32, i32) {
    %c0_i32 = arith.constant 0 : i32
    %c0_i32_0 = arith.constant 0 : i32
    %c0_i32_1 = arith.constant 0 : i32
    return %c0_i32, %c0_i32_0 : i32, i32
  }
  func.func @transform_8(%arg0: i32) -> (i32, i32) {
    %c0_i32 = arith.constant 0 : i32
    %c0_i32_0 = arith.constant 0 : i32
    %c0_i32_1 = arith.constant 0 : i32
    return %c0_i32, %c0_i32_0 : i32, i32
  }
  func.func @transform_9(%arg0: i32) -> (i32, i32) {
    %c0_i32 = arith.constant 0 : i32
    %c0_i32_0 = arith.constant 0 : i32
    %c0_i32_1 = arith.constant 0 : i32
    return %c0_i32, %c0_i32_0 : i32, i32
  }
  func.func @transform_10(%arg0: i32) -> (i32, i32) {
    %c0_i32 = arith.constant 0 : i32
    %c0_i32_0 = arith.constant 0 : i32
    return %c0_i32, %arg0 : i32, i32
  }
}

</mosaic_0001>

<bundles_post_ra>
// kernel: two_tower_forward.1
= control target key start
LH: loop header
LB: loop body
LE: loop exit
PB: predicated region body
PF: predicated region fallthrough
CT: control target
= control target key end

     0   :  { %vm71_vm0 = vcmask 130048   ;;  %v800_v2 = vmov 0   ;;  %vm201_vm1 = vcmask 261120   ;;  %s1001_s0 = inlined_call_operand.vmem [shape: bf16[16,128], index: 0, kind: input, shape index: {}]   ;;  %s1002_s2 = inlined_call_operand.vmem [shape: f32[32,16], index: 2, kind: input, shape index: {}]   ;;  %s1003_s1 = inlined_call_operand.vmem [shape: bf16[16,128], index: 1, kind: input, shape index: {}]   ;;  %s1004_s3 = inlined_call_operand.vmem [shape: f32[32,1], index: 3, kind: input, shape index: {}]   ;;  %s1005_s6 = inlined_call_operand.vmem [shape: f32[32,16], index: 6, kind: input, shape index: {}]   ;;  %s1006_s7 = inlined_call_operand.vmem [shape: f32[32,1], index: 7, kind: input, shape index: {}]   ;;  %s1007_s5 = inlined_call_operand.vmem [shape: f32[32,1], index: 5, kind: input, shape index: {}]   ;;  %s1008_s9 = inlined_call_operand.vmem [shape: f32[32,1], index: 9, kind: input, shape index: {}]   ;;  %s1009_s4 = inlined_call_operand.vmem [shape: f32[32,32], index: 4, kind: input, shape index: {}]   ;;  %s1010_s8 = inlined_call_operand.vmem [shape: f32[32,32], index: 8, kind: input, shape index: {}]   ;;  %s1011_s10 = inlined_call_operand.vmem [shape: f32[1,128], index: 10, kind: output, shape index: {}]  }
   0x1   :  { %v682_v0 = vld [vmem:[%s1001_s0] sm:$0xff]   ;;  %790 = vset.pattern.permute.xlu0 %v800_v2  ;;  %791 = vset.pattern.permute.xlu1 %v800_v2  ;;  %v44_v4 = vld [vmem:[%s1002_s2 + $0x8] sm:$0xff]  ;;  %v45_v5 = vld [vmem:[%s1002_s2 + $0x10] sm:$0xff] }
   0x2   :  { %v43_v1 = vld [vmem:[%s1002_s2] sm:$0xff]  ;;  %766 = vmatprep.subr.bf16.mxu0 %v682_v0  ;;  %v49_v7 = vld [vmem:[%s1004_s3 + $0x10] sm:$0xff]  ;;  %v48_v8 = vld [vmem:[%s1004_s3 + $0x8] sm:$0xff] }
   0x3   :  { %721 = vmatprep.mubr.msk.f32.mxu0 %vm71_vm0, %v43_v1  ;;  %v686_v3 = vld [vmem:[%s1003_s1] sm:$0xff]   ;;  %768 = vmatpush3.bf16.msra.mxu0 %v682_v0  ;;  %v50_v9 = vld [vmem:[%s1004_s3 + $0x18] sm:$0xff]  ;;  %v308_v13 = vld [vmem:[%s1006_s7 + $0x8] sm:$0xff] }
   0x4   :  { %778 = vmatprep.subr.bf16.mxu0 %v686_v3  ;;  %v47_v6 = vld [vmem:[%s1004_s3] sm:$0xff]  ;;  %63 = vperm.xlu1 %791, %v49_v7   ;;  %v46_v10 = vld [vmem:[%s1002_s2 + $0x18] sm:$0xff]  ;;  %v304_v14 = vld [vmem:[%s1005_s6 + $0x8] sm:$0xff] }
   0x5   :  { %53 = vperm.xlu0 %790, %v47_v6   ;;  %v303_v11 = vld [vmem:[%s1005_s6] sm:$0xff]  ;;  %v305_v15 = vld [vmem:[%s1005_s6 + $0x10] sm:$0xff]  ;;  %v310_v17 = vld [vmem:[%s1006_s7 + $0x18] sm:$0xff] }
   0x6   :  { %722 = vmatmul.mubr.msk.f32.vlgmr.msra.gmra.mrb[0].mxu0 %vm71_vm0, %v44_v4  ;;  %v307_v12 = vld [vmem:[%s1006_s7] sm:$0xff]  ;;  %v309_v16 = vld [vmem:[%s1006_s7 + $0x10] sm:$0xff]  ;;  %v306_v18 = vld [vmem:[%s1005_s6 + $0x18] sm:$0xff] }
   0x7   :  { %780 = vmatpush3.bf16.msra.mxu0 %v686_v3  ;;  %724 = vmatprep.mubr.msk.f32.mxu0 %vm71_vm0, %v45_v5  ;;  %v177_v19 = vld [vmem:[%s1007_s5] sm:$0xff]  ;;  %v178_v20 = vld [vmem:[%s1007_s5 + $0x8] sm:$0xff]  ;;  %v179_v23 = vld [vmem:[%s1007_s5 + $0x10] sm:$0xff] }
   0x8   :  { %68 = vperm.xlu1 %791, %v50_v9   ;;  %v436_v21 = vld [vmem:[%s1008_s9] sm:$0xff]  ;;  %v437_v22 = vld [vmem:[%s1008_s9 + $0x8] sm:$0xff]  ;;  %v438_v24 = vld [vmem:[%s1008_s9 + $0x10] sm:$0xff] }
   0x9   :  { %58 = vperm.xlu0 %790, %v48_v8   ;;  %v180_v25 = vld [vmem:[%s1007_s5 + $0x18] sm:$0xff]  ;;  %v173_v27 = vld [vmem:[%s1009_s4] sm:$0xff]  ;;  %v174_v59 = vld [vmem:[%s1009_s4 + $0x8] sm:$0xff] }
   0xa   :  { %725 = vmatmul.mubr.msk.f32.gmra.mrb[2].mxu0 %vm71_vm0, %v46_v10  ;;  %v439_v26 = vld [vmem:[%s1008_s9 + $0x18] sm:$0xff]  ;;  %735 = vmatprep.mubr.msk.f32.mxu1 %vm201_vm1, %v173_v27  ;;  %v175_v62 = vld [vmem:[%s1009_s4 + $0x10] sm:$0xff]  ;;  %v432_v3 = vld [vmem:[%s1010_s8] sm:$0xff] }
   0xb   :  { %745 = vmatprep.mubr.msk.f32.mxu0 %vm71_vm0, %v303_v11  ;;  %v176_v1 = vld [vmem:[%s1009_s4 + $0x18] sm:$0xff]  ;;  %v433_v4 = vld [vmem:[%s1010_s8 + $0x8] sm:$0xff]  ;;  %v434_v5 = vld [vmem:[%s1010_s8 + $0x10] sm:$0xff] }
   0xc   :  { %318 = vperm.xlu1 %791, %v308_v13   ;;  %v435_v6 = vld [vmem:[%s1010_s8 + $0x18] sm:$0xff] }
   0xd   :  { %313 = vperm.xlu0 %790, %v307_v12  }
   0xe   :  { %746 = vmatmul.mubr.msk.f32.vlgmr.msra.gmra.mrb[4].mxu0 %vm71_vm0, %v304_v14 }
   0xf   :  { %748 = vmatprep.mubr.msk.f32.mxu0 %vm71_vm0, %v305_v15 }
  0x10   :  { %328 = vperm.xlu1 %791, %v310_v17  }
  0x11   :  { %323 = vperm.xlu0 %790, %v309_v16  }
  0x12   :  { %749 = vmatmul.mubr.msk.f32.gmra.mrb[6].mxu0 %vm71_vm0, %v306_v18 }
  0x14   :  { %188 = vperm.xlu1 %791, %v178_v20  }
  0x15   :  { %183 = vperm.xlu0 %790, %v177_v19  }
  0x18   :  { %447 = vperm.xlu1 %791, %v437_v22  }
  0x19   :  { %442 = vperm.xlu0 %790, %v436_v21  }
  0x1c   :  { %452 = vperm.xlu1 %791, %v438_v24  }
  0x1d   :  { %193 = vperm.xlu0 %790, %v179_v23  }
  0x20   :  { %457 = vperm.xlu1 %791, %v439_v26  }
  0x21   :  { %198 = vperm.xlu0 %790, %v180_v25  }
  0x83   :  { %v64_v29 = vpop.permute.xlu1 %63 }
  0x84   :  { %v54_v28 = vpop.permute.xlu0 %53 }
  0x87   :  { %v69_v31 = vpop.permute.xlu1 %68 }
  0x88   :  { %v59_v30 = vpop.permute.xlu0 %58 }
  0x8b   :  { %v319_v41 = vpop.permute.xlu1 %318 }
  0x8c   :  { %v314_v44 = vpop.permute.xlu0 %313 }
  0x8f   :  { %v329_v53 = vpop.permute.xlu1 %328 }
  0x90   :  { %v324_v56 = vpop.permute.xlu0 %323 }
  0x93   :  { %v189_v9 = vpop.permute.xlu1 %188 }
  0x94   :  { %v184_v7 = vpop.permute.xlu0 %183 }
  0x97   :  { %v448_v11 = vpop.permute.xlu1 %447 }
  0x98   :  { %v443_v8 = vpop.permute.xlu0 %442 }
  0x9b   :  { %v453_v23 = vpop.permute.xlu1 %452 }
  0x9c   :  { %v194_v10 = vpop.permute.xlu0 %193 }
  0xa0   :  { %v199_v17 = vpop.permute.xlu0 %198 }
  0xd9   :  { %v723_v32 = vpop.f32.mrb[0].mxu0 }
  0xda   :  { %v156_v33 = vadd.f32 %v723_v32, %v59_v30  ;;  %v150_v34 = vpop.f32.mrb[1].mxu0 }
  0xdb   :  { %v151_v35 = vadd.f32 %v150_v34, %v54_v28 }
  0xdc   :  { %v170_v36 = vmax.f32 %v156_v33, 0.0 }
  0xdd   :  { %v169_v37 = vmax.f32 %v151_v35, 0.0  ;;  %v726_v38 = vpop.f32.mrb[2].mxu0  ;;  %v458_v35 = vpop.permute.xlu1 %457 }
  0xde   :  { %v166_v39 = vadd.f32 %v726_v38, %v69_v31  ;;  %v160_v40 = vpop.f32.mrb[3].mxu0 }
  0xdf   :  { %v161_v42 = vadd.f32 %v160_v40, %v64_v29  ;;  %v769_v43 = vpack.c.bf16 %v170_v36, %v169_v37 }
  0xe0   :  { %v172_v45 = vmax.f32 %v166_v39, 0.0 }
  0xe1   :  { %v171_v46 = vmax.f32 %v161_v42, 0.0  ;;  %770 = vmatprep.subr.bf16.mxu1 %v769_v43  ;;  %v747_v47 = vpop.f32.mrb[4].mxu0 }
  0xe2   :  { %v415_v48 = vadd.f32 %v747_v47, %v319_v41  ;;  %772 = vmatpush3.bf16.msra.mxu1 %v769_v43  ;;  %v409_v49 = vpop.f32.mrb[5].mxu0 }
  0xe3   :  { %v773_v50 = vpack.c.bf16 %v172_v45, %v171_v46  ;;  %v410_v51 = vadd.f32 %v409_v49, %v314_v44 }
  0xe4   :  { %v429_v52 = vmax.f32 %v415_v48, 0.0 }
  0xe5   :  { %v428_v54 = vmax.f32 %v410_v51, 0.0  ;;  %774 = vmatprep.subr.bf16.mxu1 %v773_v50  ;;  %v750_v55 = vpop.f32.mrb[6].mxu0 }
  0xe6   :  { %v425_v57 = vadd.f32 %v750_v55, %v329_v53  ;;  %776 = vmatpush3.bf16.msra.mxu1 %v773_v50  ;;  %v419_v58 = vpop.f32.mrb[7].mxu0 }
  0xe7   :  { %v781_v60 = vpack.c.bf16 %v429_v52, %v428_v54  ;;  %v420_v61 = vadd.f32 %v419_v58, %v324_v56 }
  0xe8   :  { %v431_v63 = vmax.f32 %v425_v57, 0.0 }
  0xe9   :  { %v430_v0 = vmax.f32 %v420_v61, 0.0  ;;  %736 = vmatmul.mubr.msk.f32.vlgmr.msra.gmra.mrb[0].mxu1 %vm201_vm1, %v174_v59  ;;  %782 = vmatprep.subr.bf16.mxu1 %v781_v60 }
  0xea   :  { %784 = vmatpush3.bf16.msra.mxu1 %v781_v60  ;;  %738 = vmatprep.mubr.msk.f32.mxu1 %vm201_vm1, %v175_v62 }
  0xeb   :  { %v785_v2 = vpack.c.bf16 %v431_v63, %v430_v0 }
  0xed   :  { %739 = vmatmul.mubr.msk.f32.gmra.mrb[2].mxu1 %vm201_vm1, %v176_v1  ;;  %786 = vmatprep.subr.bf16.mxu1 %v785_v2 }
  0xee   :  { %788 = vmatpush3.bf16.msra.mxu1 %v785_v2  ;;  %759 = vmatprep.mubr.msk.f32.mxu1 %vm201_vm1, %v432_v3 }
  0xf1   :  { %760 = vmatmul.mubr.msk.f32.vlgmr.msra.gmra.mrb[4].mxu1 %vm201_vm1, %v433_v4 }
  0xf2   :  { %762 = vmatprep.mubr.msk.f32.mxu1 %vm201_vm1, %v434_v5 }
  0xf5   :  { %763 = vmatmul.mubr.msk.f32.gmra.mrb[6].mxu1 %vm201_vm1, %v435_v6 }
 0x1bc   :  { %v737_v12 = vpop.f32.mrb[0].mxu1 }
 0x1bd   :  { %v286_v13 = vadd.f32 %v737_v12, %v189_v9  ;;  %v280_v14 = vpop.f32.mrb[1].mxu1 }
 0x1be   :  { %v281_v15 = vadd.f32 %v280_v14, %v184_v7 }
 0x1bf   :  { %v974_v16 = vmax.f32 %v286_v13, 0.0 }
 0x1c0   :  { %v976_v18 = vmax.f32 %v281_v15, 0.0  ;;  %v740_v19 = vpop.f32.mrb[2].mxu1 }
 0x1c1   :  { %v562_v20 = vmul.f32 %v974_v16, %v974_v16  ;;  %v296_v21 = vadd.f32 %v740_v19, %v199_v17  ;;  %v290_v22 = vpop.f32.mrb[3].mxu1 }
 0x1c2   :  { %v561_v24 = vmul.f32 %v976_v18, %v976_v18  ;;  %v291_v25 = vadd.f32 %v290_v22, %v194_v10 }
 0x1c3   :  { %v982_v27 = vmax.f32 %v296_v21, 0.0 }
 0x1c4   :  { %v565_v26 = vadd.f32 %v562_v20, %v561_v24  ;;  %v984_v28 = vmax.f32 %v291_v25, 0.0  ;;  %v761_v29 = vpop.f32.mrb[4].mxu1  ;;  %v604_v24 = vsub.f32 0.0, %v974_v16  ;;  %v603_v25 = vsub.f32 0.0, %v976_v18 }
 0x1c5   :  { %v544_v30 = vadd.f32 %v761_v29, %v448_v11  ;;  %v538_v31 = vpop.f32.mrb[5].mxu1  ;;  %v564_v36 = vmul.f32 %v982_v27, %v982_v27 }
 0x1c6   :  { %v563_v32 = vmul.f32 %v984_v28, %v984_v28  ;;  %v539_v33 = vadd.f32 %v538_v31, %v443_v8  ;;  %v605_v29 = vsub.f32 0.0, %v984_v28 }
 0x1c7   :  { %v558_v34 = vmax.f32 %v544_v30, 0.0 }
 0x1c8   :  { %v566_v37 = vadd.f32 %v565_v26, %v563_v32  ;;  %v557_v38 = vmax.f32 %v539_v33, 0.0  ;;  %v764_v39 = vpop.f32.mrb[6].mxu1  ;;  %v606_v26 = vsub.f32 0.0, %v982_v27 }
 0x1c9   :  { %v575_v40 = vmul.f32 %v558_v34, %v558_v34  ;;  %v588_v41 = vmul.f32 %v558_v34, %v974_v16  ;;  %v554_v42 = vadd.f32 %v764_v39, %v458_v35  ;;  %v548_v43 = vpop.f32.mrb[7].mxu1 }
 0x1ca   :  { %v567_v44 = vadd.f32 %v566_v37, %v564_v36  ;;  %v574_v45 = vmul.f32 %v557_v38, %v557_v38  ;;  %v587_v46 = vmul.f32 %v557_v38, %v976_v18  ;;  %v549_v47 = vadd.f32 %v548_v43, %v453_v23 }
 0x1cb   :  { %v560_v48 = vmax.f32 %v554_v42, 0.0 }
 0x1cc   :  { %v568_v49 = vrot.slane %v567_v44, 4  ;;  %v578_v50 = vadd.f32 %v575_v40, %v574_v45  ;;  %v591_v51 = vadd.f32 %v588_v41, %v587_v46  ;;  %v559_v52 = vmax.f32 %v549_v47, 0.0 }
 0x1cd   :  { %v590_v53 = vmul.f32 %v560_v48, %v982_v27  ;;  %v577_v58 = vmul.f32 %v560_v48, %v560_v48 }
 0x1ce   :  { %v569_v54 = vadd.f32 %v568_v49, %v567_v44  ;;  %v576_v55 = vmul.f32 %v559_v52, %v559_v52  ;;  %v589_v56 = vmul.f32 %v559_v52, %v984_v28 }
 0x1d0   :  { %v570_v57 = vrot.slane %v569_v54, 2  ;;  %v579_v59 = vadd.f32 %v578_v50, %v576_v55  ;;  %v592_v60 = vadd.f32 %v591_v51, %v589_v56 }
 0x1d2   :  { %v571_v61 = vadd.f32 %v570_v57, %v569_v54  ;;  %v580_v62 = vadd.f32 %v579_v59, %v577_v58  ;;  %v593_v63 = vadd.f32 %v592_v60, %v590_v53 }
 0x1d4   :  { %v572_v0 = vrot.slane %v571_v61, 1  ;;  %v581_v1 = vrot.slane %v580_v62, 4  ;;  %v594_v2 = vrot.slane %v593_v63, 4 }
 0x1d6   :  { %v573_v3 = vadd.f32 %v572_v0, %v571_v61  ;;  %v582_v4 = vadd.f32 %v581_v1, %v580_v62  ;;  %v595_v5 = vadd.f32 %v594_v2, %v593_v63 }
 0x1d8   :  { %v611_v6 = vsub.f32 1.0, %v573_v3  ;;  %v583_v7 = vrot.slane %v582_v4, 2  ;;  %v596_v8 = vrot.slane %v595_v5, 2 }
 0x1da   :  { %v613_v9 = vmul.f32 %v611_v6, %v558_v34  ;;  %v612_v10 = vmul.f32 %v611_v6, %v557_v38  ;;  %v615_v11 = vmul.f32 %v611_v6, %v560_v48  ;;  %v584_v12 = vadd.f32 %v583_v7, %v582_v4 }
 0x1db   :  { %v597_v13 = vadd.f32 %v596_v8, %v595_v5  ;;  %v614_v14 = vmul.f32 %v611_v6, %v559_v52 }
 0x1dc   :  { %v585_v15 = vrot.slane %v584_v12, 1 }
 0x1dd   :  { %v598_v17 = vrot.slane %v597_v13, 1 }
 0x1de   :  { %v586_v19 = vadd.f32 %v585_v15, %v584_v12 }
 0x1df   :  { %v599_v20 = vadd.f32 %v598_v17, %v597_v13 }
 0x1e0   :  { %v620_v21 = vmul.f32 %v586_v19, %v573_v3 }
 0x1e1   :  { %v600_v22 = vmul.f32 2.0, %v599_v20 }
 0x1e3   :  { %v601_v23 = vsub.f32 1.0, %v600_v22 }
 0x1e5   :  { %v602_v30 = vadd.f32 %v601_v23, %v586_v19  ;;  %v621_v31 = vadd.f32 %v620_v21, %v601_v23 }
 0x1e7   :  { %v607_v32 = vmul.f32 %v603_v25, %v602_v30  ;;  %v608_v33 = vmul.f32 %v604_v24, %v602_v30  ;;  %v609_v34 = vmul.f32 %v605_v29, %v602_v30  ;;  %v610_v35 = vmul.f32 %v606_v26, %v602_v30 }
 0x1e8   :  { %v622_v36 = vmax.f32 %v621_v31, 1e-15 }
 0x1e9   :  { %v616_v37 = vadd.f32 %v612_v10, %v607_v32  ;;  %v617_v38 = vadd.f32 %v613_v9, %v608_v33  ;;  %v618_v39 = vadd.f32 %v614_v14, %v609_v34  ;;  %v619_v40 = vadd.f32 %v615_v11, %v610_v35 }
 0x1ea   :  { %792 = vrcp.f32 %v622_v36 }
 0x1f4   :  { %v793_v41 = vpop.eup %792 }
 0x1f5   :  { %v624_v16 = vmul.f32 %v793_v41, %v616_v37  ;;  %v625_v42 = vmul.f32 %v793_v41, %v617_v38  ;;  %v626_v18 = vmul.f32 %v793_v41, %v618_v39  ;;  %v627_v43 = vmul.f32 %v793_v41, %v619_v40 }
 0x1f7   :  { %v628_v27 = vmul.f32 %v624_v16, %v624_v16  ;;  %v629_v44 = vmul.f32 %v625_v42, %v625_v42  ;;  %v630_v28 = vmul.f32 %v626_v18, %v626_v18  ;;  %v631_v46 = vmul.f32 %v627_v43, %v627_v43 }
 0x1f9   :  { %v632_v45 = vadd.f32 %v629_v44, %v628_v27 }
 0x1fb   :  { %v633_v47 = vadd.f32 %v632_v45, %v630_v28 }
 0x1fd   :  { %v634_v48 = vadd.f32 %v633_v47, %v631_v46 }
 0x1ff   :  { %v635_v49 = vrot.slane %v634_v48, 4 }
 0x201   :  { %v636_v50 = vadd.f32 %v635_v49, %v634_v48 }
 0x203   :  { %v637_v51 = vrot.slane %v636_v50, 2 }
 0x205   :  { %v638_v52 = vadd.f32 %v637_v51, %v636_v50 }
 0x207   :  { %v639_v53 = vrot.slane %v638_v52, 1 }
 0x209   :  { %v640_v54 = vadd.f32 %v639_v53, %v638_v52 }
 0x20b   :  { %v641_v55 = vmax.f32 %v640_v54, 1e-15 }
 0x20d   :  { %794 = vrsqrt.f32 %v641_v55  ;;  %vm644_vm2 = vcmp.eq.f32.partialorder %v641_v55, inf  ;;  %v647_v58 = vand.u32 2147483648, %v641_v55  ;;  %vm646_vm3 = vcmp.eq.f32.partialorder %v641_v55, 0.0 }
 0x217   :  { %v795_v56 = vpop.eup %794 }
 0x218   :  { %v643_v57 = vmul.f32 %v795_v56, %v641_v55 }
 0x21a   :  { %v645_v59 = vsel %vm644_vm2, %v641_v55, %v643_v57 }
 0x21b   :  { %v648_v60 = vsel %vm646_vm3, %v647_v58, %v645_v59 }
 0x21c   :  { %v680_v61 = vclamps-f32 %v648_v60, 0.99999 }
 0x21e   :  { %v652_v62 = vsub.f32 1.0, %v680_v61  ;;  %v651_v63 = vadd.f32 1.0, %v680_v61 }
 0x220   :  { %796 = vrcp.f32 %v652_v62 }
 0x22a   :  { %v797_v0 = vpop.eup %796 }
 0x22b   :  { %v654_v1 = vmul.f32 %v797_v0, %v651_v63 }
 0x22d   :  { %798 = vlog2.f32 %v654_v1 }
 0x237   :  { %v799_v2 = vpop.eup %798 }
 0x238   :  { %v656_v3 = vmul.f32 0.6931472, %v799_v2 }
 0x23a   :  { %v657_v4 = vmax.f32 %v656_v3, 0.0 }
 0x23c   :  { %v658_v5 = vsub.f32 0.0, %v657_v4 }
 0x23e   :  { %659 = vst [vmem:[%s1011_s10] sm:$0x1] %v658_v5 }

</bundles_post_ra>
